<compile_context>
chip_gen: v6e
topology: v6e:2x2x1
jax: 0.10.0
libtpu: 0.0.40
codegen_flags: <defaults>
</compile_context>

<pallas_src>
import functools

import jax
import jax.numpy as jnp
from jax.experimental import pallas as pl
from jax.experimental.pallas import tpu as pltpu

_HP = 64          # padded hidden width for every layer inside the kernel
_NEG_BIG = -1e30  # "minus infinity" for padded logit rows


def _round_up(x, m):
    return ((x + m - 1) // m) * m


def actor_kernel(xt_ref, w1t_ref, w_ref, b_ref, out_ref):
    """One batch tile (batch on lanes): 4 matmuls + ReLUs + softmax.

    xt_ref:  (obs_dims, tb)     x^T tile (any float dtype), streamed
    w1t_ref: (64, obs_dims) bf16  W1^T, resident
    w_ref:   (192, 64) bf16     [W2^T ; W3^T_pad ; W4^T_pad], 64-row aligned,
                                resident
    b_ref:   (256, 1) f32       [b1 ; b2 ; b3_pad(0) ; b4_pad(-1e30)] columns
    out_ref: (out_rows, tb) f32 softmax probabilities (rows >= n_actions padded)
    """
    xt = xt_ref[...].astype(jnp.bfloat16)                       # (obs, tb)

    # fc1 + ReLU: (64, obs) @ (obs, tb) -> (64, tb), N = tb on the MXU
    h = jnp.dot(w1t_ref[...], xt, preferred_element_type=jnp.float32)
    h = jnp.maximum(h + b_ref[0:64, :], 0.0).astype(jnp.bfloat16)

    # fc2 + ReLU
    h = jnp.dot(w_ref[0:64, :], h, preferred_element_type=jnp.float32)
    h = jnp.maximum(h + b_ref[64:128, :], 0.0).astype(jnp.bfloat16)

    # fc3 + ReLU (rows 32:64 of W3^T are zero-padded -> stay exactly 0)
    h = jnp.dot(w_ref[64:128, :], h, preferred_element_type=jnp.float32)
    h = jnp.maximum(h + b_ref[128:192, :], 0.0).astype(jnp.bfloat16)

    # out layer: padded logit rows get bias -1e30 -> exp() == 0 below
    logits = jnp.dot(w_ref[128:192, :], h, preferred_element_type=jnp.float32)
    logits = logits + b_ref[192:256, :]                          # (64, tb)

    # numerically-stable softmax over the action (sublane) axis, f32 throughout
    m = jnp.max(logits, axis=0, keepdims=True)                   # (1, tb)
    e = jnp.exp(logits - m)                                      # (64, tb)
    s = jnp.sum(e, axis=0, keepdims=True)                        # (1, tb)
    probs = e * pl.reciprocal(s, approx=True)

    # lane-dense store: out_rows (=8) aligned sublane slice, tb lanes wide
    out_ref[...] = probs[0:out_ref.shape[0], :]


def pack_params(params, obs_dims, n_actions):
    """Pack transposed weights into aligned bf16 slabs + one f32 bias slab."""
    assert n_actions <= _HP, "kernel packs the action head into 64 rows"
    # W1^T kept separate (ragged obs columns); used whole, no slicing needed.
    w1t = params["w1"].T.astype(jnp.bfloat16)                    # (64, obs)

    w2t = params["w2"].T                                         # (64, 64)
    w3t = jnp.zeros((_HP, 64), jnp.float32).at[:32, :].set(params["w3"].T)
    w4t = jnp.zeros((_HP, _HP), jnp.float32).at[:n_actions, :32].set(
        params["w4"].T)
    # Segments start at rows 0 / 64 / 128 -> aligned to the (16,128) bf16 tile.
    w_slab = jnp.concatenate([w2t, w3t, w4t], axis=0).astype(jnp.bfloat16)

    b_slab = jnp.zeros((256, 1), jnp.float32)
    b_slab = b_slab.at[0:64, 0].set(params["b1"])
    b_slab = b_slab.at[64:128, 0].set(params["b2"])
    b_slab = b_slab.at[128:160, 0].set(params["b3"])             # rows 160:192 = 0
    b4_col = jnp.full((_HP,), _NEG_BIG, jnp.float32).at[:n_actions].set(
        params["b4"])
    b_slab = b_slab.at[192:256, 0].set(b4_col)
    return w1t, w_slab, b_slab


@functools.partial(
    jax.jit,
    static_argnames=("obs_dims", "n_actions", "tb_max", "core_parallel"))
def actor_forward(x, w1t, w_slab, b_slab, *, obs_dims, n_actions,
                  tb_max=2048, core_parallel=False):
    """x: any shape flattening to [-1, obs_dims]; returns [B, n_actions] f32."""
    x2d = x.reshape(-1, obs_dims)
    batch = x2d.shape[0]
    # Batch rides the lane / MXU-N axis: transpose once in XLA (tiny), then
    # every activation inside the kernel is lane-dense.
    xt = x2d.T                                                    # (obs, B)

    out_rows = _round_up(n_actions, 8)

    # Lane tile: multiple of 128 (Pallas masks the ragged final block), capped
    # at tb_max, and sized so batches > 128 give >= 2 grid steps for v7x's two
    # TensorCores.  Double-buffered x/out blocks at tb=2048 are ~256 KiB.
    if batch <= 128:
        tb = batch                       # single block == full lane dim
    else:
        tb = min(tb_max, _round_up((batch + 1) // 2, 128))
    ngrid = pl.cdiv(batch, tb)

    sem = pltpu.CORE_PARALLEL if core_parallel else pltpu.PARALLEL

    flops = 2 * batch * (64 * obs_dims + 3 * 64 * 64)
    bytes_accessed = (xt.size * xt.dtype.itemsize
                      + out_rows * batch * 4
                      + w1t.size * 2 + w_slab.size * 2 + b_slab.size * 4)

    out = pl.pallas_call(
        actor_kernel,
        out_shape=jax.ShapeDtypeStruct((out_rows, batch), jnp.float32),
        grid=(ngrid,),
        in_specs=[
            pl.BlockSpec((obs_dims, tb), lambda i: (0, i)),   # x^T, streamed
            pl.BlockSpec(w1t.shape, lambda i: (0, 0)),        # resident W1^T
            pl.BlockSpec(w_slab.shape, lambda i: (0, 0)),     # resident W2-4^T
            pl.BlockSpec(b_slab.shape, lambda i: (0, 0)),     # resident biases
        ],
        out_specs=pl.BlockSpec((out_rows, tb), lambda i: (0, i)),
        compiler_params=pltpu.CompilerParams(dimension_semantics=(sem,)),
        cost_estimate=pl.CostEstimate(flops=flops,
                                      transcendentals=batch * 64,
                                      bytes_accessed=bytes_accessed),
    )(xt, w1t, w_slab, b_slab)

    # Drop padded action rows and return (B, n_actions), matching PyTorch.
    return out[:n_actions, :].T


def init_params(key, obs_dims, n_actions):
    """PyTorch-style uniform(-1/sqrt(fan_in), 1/sqrt(fan_in)) init (f32)."""
    dims = [(obs_dims, 64), (64, 64), (64, 32), (32, n_actions)]
    params = {}
    keys = jax.random.split(key, 2 * len(dims))
    for i, (fan_in, fan_out) in enumerate(dims):
        bound = 1.0 / float(fan_in) ** 0.5
        params[f"w{i + 1}"] = jax.random.uniform(
            keys[2 * i], (fan_in, fan_out), minval=-bound, maxval=bound,
            dtype=jnp.float32)
        params[f"b{i + 1}"] = jax.random.uniform(
            keys[2 * i + 1], (fan_out,), minval=-bound, maxval=bound,
            dtype=jnp.float32)
    return params


def actor_reference(x, params, obs_dims):
    """Pure-JAX f32 reference matching the PyTorch forward."""
    h = x.reshape(-1, obs_dims).astype(jnp.float32)
    h = jnp.maximum(h @ params["w1"] + params["b1"], 0.0)
    h = jnp.maximum(h @ params["w2"] + params["b2"], 0.0)
    h = jnp.maximum(h @ params["w3"] + params["b3"], 0.0)
    logits = h @ params["w4"] + params["b4"]
    return jax.nn.softmax(logits, axis=-1)


if __name__ == "__main__":
    # Synthetic env: observation_space = two Box(4,) spaces -> obs_dims = 8,
    # action_space.n = 4 actions.
    obs_dims = 8
    n_actions = 4

    key = jax.random.PRNGKey(0)
    k_param, k_x1, k_x2 = jax.random.split(key, 3)
    params = init_params(k_param, obs_dims, n_actions)
    w1t, w_slab, b_slab = pack_params(params, obs_dims, n_actions)

    def check(x):
        probs = actor_forward(x, w1t, w_slab, b_slab,
                              obs_dims=obs_dims, n_actions=n_actions)
        probs = jax.block_until_ready(probs)
        b = x.reshape(-1, obs_dims).shape[0]
        assert probs.shape == (b, n_actions)
        assert bool(jnp.all(jnp.isfinite(probs)))
        # approx reciprocal + bf16 matmuls -> row sums within ~1e-3 of 1.0
        assert bool(jnp.allclose(jnp.sum(probs, axis=-1), 1.0, atol=5e-3))
        ref = jax.block_until_ready(actor_reference(x, params, obs_dims))
        assert bool(jnp.allclose(probs, ref, atol=5e-2))

    # Small batch (single block, block == full lane dim).
    x_small = jax.random.normal(k_x1, (8, obs_dims), dtype=jnp.float32)
    check(x_small)

    # Larger, non-multiple-of-128 batch: >=2 grid steps + ragged masked block.
    x_big = jax.random.normal(k_x2, (300, obs_dims), dtype=jnp.float32)
    check(x_big)

    print("KERNEL_OK")
</pallas_src>

<mosaic_0001>
module attributes {stable_mosaic.version = 11 : i64} {
  func.func @actor_kernel(%arg0: i32, %arg1: memref<8x8xf32, #tpu.memory_space<vmem>>, %arg2: memref<64x8xbf16, #tpu.memory_space<vmem>>, %arg3: memref<192x64xbf16, #tpu.memory_space<vmem>>, %arg4: memref<256x1xf32, #tpu.memory_space<vmem>>, %arg5: memref<8x8xf32, #tpu.memory_space<vmem>>) attributes {dimension_semantics = [#tpu.dimension_semantics<parallel>], iteration_bounds = array<i64: 1>, scalar_prefetch = 0 : i64, scratch_operands = 0 : i64, tpu.core_type = #tpu.core_type<tc>, window_params = [{transform_indices = @transform_0, window_bounds = array<i64: 8, 8>}, {pipeline_mode = #tpu.pipeline_mode<synchronous>, transform_indices = @transform_1, window_bounds = array<i64: 64, 8>}, {pipeline_mode = #tpu.pipeline_mode<synchronous>, transform_indices = @transform_2, window_bounds = array<i64: 192, 64>}, {pipeline_mode = #tpu.pipeline_mode<synchronous>, transform_indices = @transform_3, window_bounds = array<i64: 256, 1>}, {transform_indices = @transform_4, window_bounds = array<i64: 8, 8>}]} {
    %c0 = arith.constant 0 : index
    %c0_0 = arith.constant 0 : index
    %0 = vector.load %arg1[%c0, %c0_0] : memref<8x8xf32, #tpu.memory_space<vmem>>, vector<8x8xf32>
    %1 = arith.truncf %0 : vector<8x8xf32> to vector<8x8xbf16>
    %c0_1 = arith.constant 0 : index
    %c0_2 = arith.constant 0 : index
    %2 = vector.load %arg2[%c0_1, %c0_2] : memref<64x8xbf16, #tpu.memory_space<vmem>>, vector<64x8xbf16>
    %cst = arith.constant dense<0.000000e+00> : vector<64x8xf32>
    %3 = tpu.matmul %2, %1, %cst {dimension_numbers = #tpu.dot_dimension_numbers<[1], [0], [0], [1], [0, 0, 1, 1], [], []>} : vector<64x8xbf16>, vector<8x8xbf16>, vector<64x8xf32> -> vector<64x8xf32>
    %c0_3 = arith.constant 0 : index
    %c0_4 = arith.constant 0 : index
    %4 = vector.load %arg4[%c0_3, %c0_4] : memref<256x1xf32, #tpu.memory_space<vmem>>, vector<64x1xf32>
    %5 = vector.broadcast %4 : vector<64x1xf32> to vector<64x8xf32>
    %6 = arith.addf %3, %5 : vector<64x8xf32>
    %cst_5 = arith.constant 0.000000e+00 : f32
    %7 = vector.broadcast %cst_5 : f32 to vector<64x8xf32>
    %8 = arith.maximumf %6, %7 : vector<64x8xf32>
    %9 = arith.truncf %8 : vector<64x8xf32> to vector<64x8xbf16>
    %c0_6 = arith.constant 0 : index
    %c0_7 = arith.constant 0 : index
    %10 = vector.load %arg3[%c0_6, %c0_7] : memref<192x64xbf16, #tpu.memory_space<vmem>>, vector<64x64xbf16>
    %cst_8 = arith.constant dense<0.000000e+00> : vector<64x8xf32>
    %11 = tpu.matmul %10, %9, %cst_8 {dimension_numbers = #tpu.dot_dimension_numbers<[1], [0], [0], [1], [0, 0, 1, 1], [], []>} : vector<64x64xbf16>, vector<64x8xbf16>, vector<64x8xf32> -> vector<64x8xf32>
    %c64 = arith.constant 64 : index
    %c0_9 = arith.constant 0 : index
    %12 = vector.load %arg4[%c64, %c0_9] : memref<256x1xf32, #tpu.memory_space<vmem>>, vector<64x1xf32>
    %13 = vector.broadcast %12 : vector<64x1xf32> to vector<64x8xf32>
    %14 = arith.addf %11, %13 : vector<64x8xf32>
    %cst_10 = arith.constant 0.000000e+00 : f32
    %15 = vector.broadcast %cst_10 : f32 to vector<64x8xf32>
    %16 = arith.maximumf %14, %15 : vector<64x8xf32>
    %17 = arith.truncf %16 : vector<64x8xf32> to vector<64x8xbf16>
    %c64_11 = arith.constant 64 : index
    %c0_12 = arith.constant 0 : index
    %18 = vector.load %arg3[%c64_11, %c0_12] : memref<192x64xbf16, #tpu.memory_space<vmem>>, vector<64x64xbf16>
    %cst_13 = arith.constant dense<0.000000e+00> : vector<64x8xf32>
    %19 = tpu.matmul %18, %17, %cst_13 {dimension_numbers = #tpu.dot_dimension_numbers<[1], [0], [0], [1], [0, 0, 1, 1], [], []>} : vector<64x64xbf16>, vector<64x8xbf16>, vector<64x8xf32> -> vector<64x8xf32>
    %c128 = arith.constant 128 : index
    %c0_14 = arith.constant 0 : index
    %20 = vector.load %arg4[%c128, %c0_14] : memref<256x1xf32, #tpu.memory_space<vmem>>, vector<64x1xf32>
    %21 = vector.broadcast %20 : vector<64x1xf32> to vector<64x8xf32>
    %22 = arith.addf %19, %21 : vector<64x8xf32>
    %cst_15 = arith.constant 0.000000e+00 : f32
    %23 = vector.broadcast %cst_15 : f32 to vector<64x8xf32>
    %24 = arith.maximumf %22, %23 : vector<64x8xf32>
    %25 = arith.truncf %24 : vector<64x8xf32> to vector<64x8xbf16>
    %c128_16 = arith.constant 128 : index
    %c0_17 = arith.constant 0 : index
    %26 = vector.load %arg3[%c128_16, %c0_17] : memref<192x64xbf16, #tpu.memory_space<vmem>>, vector<64x64xbf16>
    %cst_18 = arith.constant dense<0.000000e+00> : vector<64x8xf32>
    %27 = tpu.matmul %26, %25, %cst_18 {dimension_numbers = #tpu.dot_dimension_numbers<[1], [0], [0], [1], [0, 0, 1, 1], [], []>} : vector<64x64xbf16>, vector<64x8xbf16>, vector<64x8xf32> -> vector<64x8xf32>
    %c192 = arith.constant 192 : index
    %c0_19 = arith.constant 0 : index
    %28 = vector.load %arg4[%c192, %c0_19] : memref<256x1xf32, #tpu.memory_space<vmem>>, vector<64x1xf32>
    %29 = vector.broadcast %28 : vector<64x1xf32> to vector<64x8xf32>
    %30 = arith.addf %27, %29 : vector<64x8xf32>
    %cst_20 = arith.constant dense<0xFF800000> : vector<8xf32>
    %31 = vector.multi_reduction <maximumf>, %30, %cst_20 [0] : vector<64x8xf32> to vector<8xf32>
    %32 = vector.shape_cast %31 : vector<8xf32> to vector<1x8xf32>
    %33 = vector.broadcast %32 : vector<1x8xf32> to vector<64x8xf32>
    %34 = arith.subf %30, %33 : vector<64x8xf32>
    %35 = math.exp %34 : vector<64x8xf32>
    %cst_21 = arith.constant dense<0.000000e+00> : vector<8xf32>
    %36 = vector.multi_reduction <add>, %35, %cst_21 [0] : vector<64x8xf32> to vector<8xf32>
    %37 = vector.shape_cast %36 : vector<8xf32> to vector<1x8xf32>
    %38 = tpu.reciprocal %37 {approx = true} : vector<1x8xf32> -> vector<1x8xf32>
    %39 = vector.broadcast %38 : vector<1x8xf32> to vector<64x8xf32>
    %40 = arith.mulf %35, %39 : vector<64x8xf32>
    %41 = vector.extract_strided_slice %40 {offsets = [0, 0], sizes = [8, 8], strides = [1, 1]} : vector<64x8xf32> to vector<8x8xf32>
    %c0_22 = arith.constant 0 : index
    %c0_23 = arith.constant 0 : index
    %42 = vector.load %arg5[%c0_22, %c0_23] : memref<8x8xf32, #tpu.memory_space<vmem>>, vector<8x8xf32>
    tpu.vector_store %arg5[%c0_22, %c0_23], %41 {strides = array<i32>} : memref<8x8xf32, #tpu.memory_space<vmem>>, vector<8x8xf32>,
    return
  }
  func.func @transform_0(%arg0: i32) -> (i32, i32) {
    %c0_i32 = arith.constant 0 : i32
    %c0_i32_0 = arith.constant 0 : i32
    return %c0_i32, %arg0 : i32, i32
  }
  func.func @transform_1(%arg0: i32) -> (i32, i32) {
    %c0_i32 = arith.constant 0 : i32
    %c0_i32_0 = arith.constant 0 : i32
    %c0_i32_1 = arith.constant 0 : i32
    return %c0_i32, %c0_i32_0 : i32, i32
  }
  func.func @transform_2(%arg0: i32) -> (i32, i32) {
    %c0_i32 = arith.constant 0 : i32
    %c0_i32_0 = arith.constant 0 : i32
    %c0_i32_1 = arith.constant 0 : i32
    return %c0_i32, %c0_i32_0 : i32, i32
  }
  func.func @transform_3(%arg0: i32) -> (i32, i32) {
    %c0_i32 = arith.constant 0 : i32
    %c0_i32_0 = arith.constant 0 : i32
    %c0_i32_1 = arith.constant 0 : i32
    return %c0_i32, %c0_i32_0 : i32, i32
  }
  func.func @transform_4(%arg0: i32) -> (i32, i32) {
    %c0_i32 = arith.constant 0 : i32
    %c0_i32_0 = arith.constant 0 : i32
    return %c0_i32, %arg0 : i32, i32
  }
}

</mosaic_0001>

<bundles_post_ra>
// kernel: actor_forward.1
= control target key start
LH: loop header
LB: loop body
LE: loop exit
PB: predicated region body
PF: predicated region fallthrough
CT: control target
= control target key end

     0   :  { %vm109_vm0 = vcmask 1043456   ;;  %vm96_vm1 = vcmask 64512   ;;  %v912_v1 = vmov 0   ;;  %vm266_vm2 = vcmask 523264   ;;  %s1121_s0 = inlined_call_operand.vmem [shape: f32[8,8], index: 0, kind: input, shape index: {}]   ;;  %s1122_s1 = inlined_call_operand.vmem [shape: bf16[64,8], index: 1, kind: input, shape index: {}]   ;;  %s1123_s3 = inlined_call_operand.vmem [shape: f32[256,1], index: 3, kind: input, shape index: {}]   ;;  %s1124_s2 = inlined_call_operand.vmem [shape: bf16[192,64], index: 2, kind: input, shape index: {}]   ;;  %s1125_s4 = inlined_call_operand.vmem [shape: f32[8,8], index: 4, kind: output, shape index: {}]  }
   0x1   :  { %v18_v0 = vld [vmem:[%s1121_s0] sm:$0xff]  ;;  %876 = vset.pattern.permute.xlu0 %v912_v1  ;;  %877 = vset.pattern.permute.xlu1 %v912_v1  ;;  %v879_v5 = vld [vmem:[%s1122_s1 + $0x8] sm:$0xff]   ;;  %v880_v6 = vld [vmem:[%s1122_s1 + $0x10] sm:$0xff]  }
   0x2   :  { %v19_v2 = vpack.c.bf16 %v18_v0, %v18_v0  ;;  %v878_v3 = vld [vmem:[%s1122_s1] sm:$0xff]   ;;  %v34_v7 = vld [vmem:[%s1123_s3 + $0x30] sm:$0xff]  ;;  %v35_v9 = vld [vmem:[%s1123_s3 + $0x38] sm:$0xff] }
   0x3   :  { %810 = vmatprep.mubr.msk.bf16.mxu0 %vm96_vm1, %v878_v3  ;;  %68 = vperm.xlu0 %876, %v34_v7   ;;  %v32_v8 = vld [vmem:[%s1123_s3 + $0x20] sm:$0xff]  ;;  %v33_v10 = vld [vmem:[%s1123_s3 + $0x28] sm:$0xff]  ;;  %v30_v11 = vld [vmem:[%s1123_s3 + $0x10] sm:$0xff] }
   0x4   :  { %874 = vmatprep.subr.msk.bf16.mxu0 %vm109_vm0, %v19_v2  ;;  %v111_v4 = vsel %vm109_vm0, %v19_v2, 0  ;;  %58 = vperm.xlu1 %877, %v32_v8   ;;  %v881_v12 = vld [vmem:[%s1122_s1 + $0x18] sm:$0xff]   ;;  %v28_v14 = vld [vmem:[%s1123_s3] sm:$0xff]  ;;  %v29_v15 = vld [vmem:[%s1123_s3 + $0x8] sm:$0xff] }
   0x5   :  { %809 = vmatpush3.bf16.msra.mxu0 %v111_v4  ;;  %v31_v13 = vld [vmem:[%s1123_s3 + $0x18] sm:$0xff]  ;;  %v204_v16 = vld [vmem:[%s1123_s3 + $0x70] sm:$0xff]  ;;  %v202_v18 = vld [vmem:[%s1123_s3 + $0x60] sm:$0xff] }
   0x6   :  { %v205_v17 = vld [vmem:[%s1123_s3 + $0x78] sm:$0xff]  ;;  %v203_v19 = vld [vmem:[%s1123_s3 + $0x68] sm:$0xff]  ;;  %v200_v20 = vld [vmem:[%s1123_s3 + $0x50] sm:$0xff] }
   0x7   :  { %73 = vperm.xlu0 %876, %v35_v9   ;;  %v201_v21 = vld [vmem:[%s1123_s3 + $0x58] sm:$0xff]  ;;  %v198_v22 = vld [vmem:[%s1123_s3 + $0x40] sm:$0xff]  ;;  %v199_v23 = vld [vmem:[%s1123_s3 + $0x48] sm:$0xff] }
   0x8   :  { %811 = vmatmul.mubr.msk.bf16.vlgmr.msra.gmra.mxu0 %vm96_vm1, %v879_v5  ;;  %63 = vperm.xlu1 %877, %v33_v10   ;;  %v370_v24 = vld [vmem:[%s1123_s3 + $0xb0] sm:$0xff]  ;;  %v371_v25 = vld [vmem:[%s1123_s3 + $0xb8] sm:$0xff]  ;;  %v368_v26 = vld [vmem:[%s1123_s3 + $0xa0] sm:$0xff] }
   0x9   :  { %814 = vmatprep.mubr.msk.bf16.mxu0 %vm96_vm1, %v880_v6  ;;  %v369_v27 = vld [vmem:[%s1123_s3 + $0xa8] sm:$0xff]  ;;  %v366_v28 = vld [vmem:[%s1123_s3 + $0x90] sm:$0xff]  ;;  %v367_v29 = vld [vmem:[%s1123_s3 + $0x98] sm:$0xff] }
   0xa   :  { %v364_v30 = vld [vmem:[%s1123_s3 + $0x80] sm:$0xff]  ;;  %v365_v31 = vld [vmem:[%s1123_s3 + $0x88] sm:$0xff]  ;;  %v531_v34 = vld [vmem:[%s1123_s3 + $0xd0] sm:$0xff] }
   0xb   :  { %48 = vperm.xlu0 %876, %v30_v11   ;;  %v529_v32 = vld [vmem:[%s1123_s3 + $0xc0] sm:$0xff]  ;;  %v530_v33 = vld [vmem:[%s1123_s3 + $0xc8] sm:$0xff]  ;;  %v532_v35 = vld [vmem:[%s1123_s3 + $0xd8] sm:$0xff] }
   0xc   :  { %53 = vperm.xlu1 %877, %v31_v13   ;;  %v533_v36 = vld [vmem:[%s1123_s3 + $0xe0] sm:$0xff]  ;;  %v534_v37 = vld [vmem:[%s1123_s3 + $0xe8] sm:$0xff]  ;;  %v535_v38 = vld [vmem:[%s1123_s3 + $0xf0] sm:$0xff] }
   0xd   :  { %v536_v39 = vld [vmem:[%s1123_s3 + $0xf8] sm:$0xff]  ;;  %v882_v40 = vld [vmem:[%s1124_s2] sm:$0xff]   ;;  %v883_v13 = vld [vmem:[%s1124_s2 + $0x8] sm:$0xff]  }
   0xe   :  { %826 = vmatprep.mubr.msk.bf16.mxu1 %vm266_vm2, %v882_v40 }
   0xf   :  { %38 = vperm.xlu0 %876, %v28_v14   ;;  %v884_v14 = vld [vmem:[%s1124_s2 + $0x10] sm:$0xff]  }
  0x10   :  { %815 = vmatmul.mubr.msk.bf16.gmra.mxu0 %vm96_vm1, %v881_v12  ;;  %43 = vperm.xlu1 %877, %v29_v15   ;;  %v885_v15 = vld [vmem:[%s1124_s2 + $0x18] sm:$0xff]  }
  0x13   :  { %238 = vperm.xlu0 %876, %v204_v16   ;;  %v886_v16 = vld [vmem:[%s1124_s2 + $0x20] sm:$0xff]  }
  0x14   :  { %243 = vperm.xlu1 %877, %v205_v17   ;;  %842 = vmatprep.mubr.msk.bf16.mxu0 %vm266_vm2, %v886_v16 }
  0x17   :  { %228 = vperm.xlu0 %876, %v202_v18  }
  0x18   :  { %233 = vperm.xlu1 %877, %v203_v19  }
  0x1b   :  { %218 = vperm.xlu0 %876, %v200_v20  }
  0x1c   :  { %223 = vperm.xlu1 %877, %v201_v21  }
  0x1f   :  { %208 = vperm.xlu0 %876, %v198_v22  }
  0x20   :  { %213 = vperm.xlu1 %877, %v199_v23  }
  0x23   :  { %404 = vperm.xlu0 %876, %v370_v24  }
  0x24   :  { %409 = vperm.xlu1 %877, %v371_v25  }
  0x27   :  { %394 = vperm.xlu0 %876, %v368_v26  }
  0x28   :  { %399 = vperm.xlu1 %877, %v369_v27  }
  0x2b   :  { %384 = vperm.xlu0 %876, %v366_v28  }
  0x2c   :  { %389 = vperm.xlu1 %877, %v367_v29  }
  0x2f   :  { %374 = vperm.xlu0 %876, %v364_v30  }
  0x30   :  { %379 = vperm.xlu1 %877, %v365_v31  }
  0x33   :  { %539 = vperm.xlu0 %876, %v529_v32  }
  0x34   :  { %544 = vperm.xlu1 %877, %v530_v33  }
  0x37   :  { %549 = vperm.xlu0 %876, %v531_v34  }
  0x38   :  { %554 = vperm.xlu1 %877, %v532_v35  }
  0x3b   :  { %559 = vperm.xlu0 %876, %v533_v36  }
  0x3c   :  { %564 = vperm.xlu1 %877, %v534_v37  }
  0x3f   :  { %569 = vperm.xlu0 %876, %v535_v38  }
  0x40   :  { %574 = vperm.xlu1 %877, %v536_v39  }
  0x7e   :  { %v69_v43 = vpop.permute.xlu0 %68 }
  0x7f   :  { %v59_v41 = vpop.permute.xlu1 %58 }
  0x82   :  { %v74_v48 = vpop.permute.xlu0 %73 }
  0x83   :  { %v64_v46 = vpop.permute.xlu1 %63 }
  0x86   :  { %v49_v56 = vpop.permute.xlu0 %48 }
  0x87   :  { %v54_v52 = vpop.permute.xlu1 %53 }
  0x8a   :  { %v39_v6 = vpop.permute.xlu0 %38 }
  0x8b   :  { %v44_v2 = vpop.permute.xlu1 %43 }
  0x8e   :  { %v239_v19 = vpop.permute.xlu0 %238 }
  0x8f   :  { %v244_v17 = vpop.permute.xlu1 %243 }
  0x92   :  { %v229_v24 = vpop.permute.xlu0 %228 }
  0x93   :  { %v234_v22 = vpop.permute.xlu1 %233 }
  0x96   :  { %v219_v32 = vpop.permute.xlu0 %218 }
  0x97   :  { %v224_v28 = vpop.permute.xlu1 %223 }
  0xc8   :  { %v812_v42 = vpop.f32.mrf.mxu0 }
  0xc9   :  { %v156_v62 = vadd.f32 %v812_v42, %v49_v56  ;;  %v214_v42 = vpop.permute.xlu1 %213  ;;  %v890_v56 = vld [vmem:[%s1124_s2 + $0x40] sm:$0xff]  }
  0xca   :  { %v147_v44 = vpop.f32.mrf.mxu0 }
  0xcb   :  { %v180_v7 = vmax.f32 %v156_v62, 0.0  ;;  %v148_v8 = vadd.f32 %v147_v44, %v39_v6 }
  0xcc   :  { %v813_v45 = vpop.f32.mrf.mxu0 }
  0xcd   :  { %v159_v58 = vadd.f32 %v813_v45, %v54_v52  ;;  %v178_v11 = vmax.f32 %v148_v8, 0.0 }
  0xce   :  { %v150_v47 = vpop.f32.mrf.mxu0 }
  0xcf   :  { %v181_v3 = vmax.f32 %v159_v58, 0.0  ;;  %v151_v4 = vadd.f32 %v150_v47, %v44_v2  ;;  %v410_v58 = vpop.permute.xlu1 %409 }
  0xd0   :  { %v816_v49 = vpop.f32.mrf.mxu0 }
  0xd1   :  { %v172_v51 = vadd.f32 %v816_v49, %v69_v43  ;;  %v187_v9 = vpack.c.bf16 %v181_v3, %v180_v7  ;;  %v179_v10 = vmax.f32 %v151_v4, 0.0 }
  0xd2   :  { %v163_v50 = vpop.f32.mrf.mxu0 }
  0xd3   :  { %v164_v54 = vadd.f32 %v163_v50, %v59_v41  ;;  %v184_v59 = vmax.f32 %v172_v51, 0.0  ;;  %v186_v12 = vpack.c.bf16 %v179_v10, %v178_v11 }
  0xd4   :  { %v817_v53 = vpop.f32.mrf.mxu0 }
  0xd5   :  { %v175_v55 = vadd.f32 %v817_v53, %v74_v48  ;;  %v182_v63 = vmax.f32 %v164_v54, 0.0  ;;  %v887_v53 = vld [vmem:[%s1124_s2 + $0x28] sm:$0xff]   ;;  %v888_v54 = vld [vmem:[%s1124_s2 + $0x30] sm:$0xff]  }
  0xd6   :  { %v166_v57 = vpop.f32.mrf.mxu0 }
  0xd7   :  { %v185_v60 = vmax.f32 %v175_v55, 0.0  ;;  %v167_v61 = vadd.f32 %v166_v57, %v64_v46  ;;  %v209_v46 = vpop.permute.xlu0 %208  ;;  %v889_v55 = vld [vmem:[%s1124_s2 + $0x38] sm:$0xff]   ;;  %v891_v57 = vld [vmem:[%s1124_s2 + $0x50] sm:$0xff]  }
  0xd9   :  { %v183_v0 = vmax.f32 %v167_v61, 0.0  ;;  %v189_v1 = vpack.c.bf16 %v185_v60, %v184_v59 }
  0xdb   :  { %v188_v5 = vpack.c.bf16 %v183_v0, %v182_v63  ;;  %818 = vmatprep.subr.bf16.mxu1 %v189_v1  ;;  %v405_v60 = vpop.permute.xlu0 %404  ;;  %v400_v63 = vpop.permute.xlu1 %399 }
  0xdc   :  { %819 = vmatpush3.bf16.msra.mxu1 %v189_v1 }
  0xdd   :  { %820 = vmatprep.subr.bf16.mxu1 %v188_v5 }
  0xdf   :  { %v395_v1 = vpop.permute.xlu0 %394 }
  0xe0   :  { %821 = vmatpush3.bf16.msra.mxu1 %v188_v5  ;;  %v390_v5 = vpop.permute.xlu1 %389 }
  0xe1   :  { %822 = vmatprep.subr.bf16.mxu1 %v187_v9 }
  0xe4   :  { %823 = vmatpush3.bf16.msra.mxu1 %v187_v9  ;;  %v385_v9 = vpop.permute.xlu0 %384 }
  0xe5   :  { %824 = vmatprep.subr.bf16.mxu1 %v186_v12 }
  0xe8   :  { %825 = vmatpush3.bf16.msra.mxu1 %v186_v12 }
  0xeb   :  { %827 = vmatmul.mubr.msk.bf16.vlgmr.msra.gmra.mxu1 %vm266_vm2, %v883_v13 }
  0xec   :  { %830 = vmatprep.mubr.msk.bf16.mxu1 %vm266_vm2, %v884_v14 }
  0xf3   :  { %831 = vmatmul.mubr.msk.bf16.gmra.mxu1 %vm266_vm2, %v885_v15 }
  0xf4   :  { %862 = vmatprep.mubr.msk.bf16.mxu1 %vm266_vm2, %v891_v57 }
 0x1ab   :  { %v828_v18 = vpop.f32.mrf.mxu1 }
 0x1ac   :  { %v322_v38 = vadd.f32 %v828_v18, %v219_v32 }
 0x1ad   :  { %v313_v20 = vpop.f32.mrf.mxu1 }
 0x1ae   :  { %v346_v47 = vmax.f32 %v322_v38, 0.0  ;;  %v314_v48 = vadd.f32 %v313_v20, %v209_v46 }
 0x1af   :  { %v829_v21 = vpop.f32.mrf.mxu1 }
 0x1b0   :  { %v325_v34 = vadd.f32 %v829_v21, %v224_v28  ;;  %v344_v51 = vmax.f32 %v314_v48, 0.0 }
 0x1b1   :  { %v316_v23 = vpop.f32.mrf.mxu1 }
 0x1b2   :  { %v347_v43 = vmax.f32 %v325_v34, 0.0  ;;  %v317_v44 = vadd.f32 %v316_v23, %v214_v42  ;;  %v375_v23 = vpop.permute.xlu0 %374 }
 0x1b3   :  { %v832_v25 = vpop.f32.mrf.mxu1 }
 0x1b4   :  { %v338_v27 = vadd.f32 %v832_v25, %v239_v19  ;;  %v353_v49 = vpack.c.bf16 %v347_v43, %v346_v47  ;;  %v345_v50 = vmax.f32 %v317_v44, 0.0  ;;  %v380_v19 = vpop.permute.xlu1 %379 }
 0x1b5   :  { %v329_v26 = vpop.f32.mrf.mxu1 }
 0x1b6   :  { %v330_v30 = vadd.f32 %v329_v26, %v229_v24  ;;  %v350_v35 = vmax.f32 %v338_v27, 0.0  ;;  %v352_v52 = vpack.c.bf16 %v345_v50, %v344_v51  ;;  %v540_v32 = vpop.permute.xlu0 %539 }
 0x1b7   :  { %v833_v29 = vpop.f32.mrf.mxu1 }
 0x1b8   :  { %v341_v31 = vadd.f32 %v833_v29, %v244_v17  ;;  %v348_v39 = vmax.f32 %v330_v30, 0.0  ;;  %v892_v30 = vld [vmem:[%s1124_s2 + $0x48] sm:$0xff]  }
 0x1b9   :  { %v332_v33 = vpop.f32.mrf.mxu1 }
 0x1ba   :  { %v351_v36 = vmax.f32 %v341_v31, 0.0  ;;  %v333_v37 = vadd.f32 %v332_v33, %v234_v22  ;;  %v893_v31 = vld [vmem:[%s1124_s2 + $0x58] sm:$0xff]   ;;  %v545_v33 = vpop.permute.xlu1 %544  ;;  %v550_v34 = vpop.permute.xlu0 %549 }
 0x1bc   :  { %v355_v40 = vpack.c.bf16 %v351_v36, %v350_v35  ;;  %v349_v41 = vmax.f32 %v333_v37, 0.0 }
 0x1be   :  { %v354_v45 = vpack.c.bf16 %v349_v41, %v348_v39  ;;  %834 = vmatprep.subr.bf16.mxu0 %v355_v40  ;;  %v555_v35 = vpop.permute.xlu1 %554  ;;  %v560_v36 = vpop.permute.xlu0 %559 }
 0x1bf   :  { %835 = vmatpush3.bf16.msra.mxu0 %v355_v40 }
 0x1c0   :  { %836 = vmatprep.subr.bf16.mxu0 %v354_v45 }
 0x1c2   :  { %v565_v37 = vpop.permute.xlu1 %564  ;;  %v570_v40 = vpop.permute.xlu0 %569 }
 0x1c3   :  { %837 = vmatpush3.bf16.msra.mxu0 %v354_v45 }
 0x1c4   :  { %838 = vmatprep.subr.bf16.mxu0 %v353_v49 }
 0x1c6   :  { %v575_v45 = vpop.permute.xlu1 %574 }
 0x1c7   :  { %839 = vmatpush3.bf16.msra.mxu0 %v353_v49 }
 0x1c8   :  { %840 = vmatprep.subr.bf16.mxu0 %v352_v52 }
 0x1cb   :  { %841 = vmatpush3.bf16.msra.mxu0 %v352_v52 }
 0x1ce   :  { %843 = vmatmul.mubr.msk.bf16.vlgmr.msra.gmra.mxu0 %vm266_vm2, %v887_v53 }
 0x1cf   :  { %846 = vmatprep.mubr.msk.bf16.mxu0 %vm266_vm2, %v888_v54 }
 0x1d6   :  { %847 = vmatmul.mubr.msk.bf16.gmra.mxu0 %vm266_vm2, %v889_v55 }
 0x1d7   :  { %858 = vmatprep.mubr.msk.bf16.mxu0 %vm266_vm2, %v890_v56 }
 0x28e   :  { %v844_v59 = vpop.f32.mrf.mxu0 }
 0x28f   :  { %v487_v15 = vadd.f32 %v844_v59, %v385_v9 }
 0x290   :  { %v478_v61 = vpop.f32.mrf.mxu0 }
 0x291   :  { %v511_v24 = vmax.f32 %v487_v15, 0.0  ;;  %v479_v25 = vadd.f32 %v478_v61, %v375_v23 }
 0x292   :  { %v845_v62 = vpop.f32.mrf.mxu0 }
 0x293   :  { %v490_v11 = vadd.f32 %v845_v62, %v390_v5  ;;  %v509_v28 = vmax.f32 %v479_v25, 0.0 }
 0x294   :  { %v481_v0 = vpop.f32.mrf.mxu0 }
 0x295   :  { %v512_v20 = vmax.f32 %v490_v11, 0.0  ;;  %v482_v21 = vadd.f32 %v481_v0, %v380_v19 }
 0x296   :  { %v848_v2 = vpop.f32.mrf.mxu0 }
 0x297   :  { %v503_v4 = vadd.f32 %v848_v2, %v405_v60  ;;  %v518_v26 = vpack.c.bf16 %v512_v20, %v511_v24  ;;  %v510_v27 = vmax.f32 %v482_v21, 0.0 }
 0x298   :  { %v494_v3 = vpop.f32.mrf.mxu0 }
 0x299   :  { %v495_v7 = vadd.f32 %v494_v3, %v395_v1  ;;  %v515_v12 = vmax.f32 %v503_v4, 0.0  ;;  %v517_v29 = vpack.c.bf16 %v510_v27, %v509_v28 }
 0x29a   :  { %v849_v6 = vpop.f32.mrf.mxu0 }
 0x29b   :  { %v506_v8 = vadd.f32 %v849_v6, %v410_v58  ;;  %v513_v16 = vmax.f32 %v495_v7, 0.0 }
 0x29c   :  { %v497_v10 = vpop.f32.mrf.mxu0 }
 0x29d   :  { %v516_v13 = vmax.f32 %v506_v8, 0.0  ;;  %v498_v14 = vadd.f32 %v497_v10, %v400_v63 }
 0x29f   :  { %v520_v17 = vpack.c.bf16 %v516_v13, %v515_v12  ;;  %v514_v18 = vmax.f32 %v498_v14, 0.0 }
 0x2a1   :  { %v519_v22 = vpack.c.bf16 %v514_v18, %v513_v16  ;;  %850 = vmatprep.subr.bf16.mxu0 %v520_v17  ;;  %866 = vmatprep.subr.bf16.mxu1 %v520_v17 }
 0x2a2   :  { %851 = vmatpush3.bf16.msra.mxu0 %v520_v17  ;;  %870 = vmatpush3.bf16.msra.mxu1 %v520_v17 }
 0x2a3   :  { %852 = vmatprep.subr.bf16.mxu0 %v519_v22  ;;  %867 = vmatprep.subr.bf16.mxu1 %v519_v22 }
 0x2a6   :  { %853 = vmatpush3.bf16.msra.mxu0 %v519_v22  ;;  %871 = vmatpush3.bf16.msra.mxu1 %v519_v22 }
 0x2a7   :  { %854 = vmatprep.subr.bf16.mxu0 %v518_v26  ;;  %868 = vmatprep.subr.bf16.mxu1 %v518_v26 }
 0x2aa   :  { %855 = vmatpush3.bf16.msra.mxu0 %v518_v26  ;;  %872 = vmatpush3.bf16.msra.mxu1 %v518_v26 }
 0x2ab   :  { %856 = vmatprep.subr.bf16.mxu0 %v517_v29  ;;  %869 = vmatprep.subr.bf16.mxu1 %v517_v29 }
 0x2ae   :  { %857 = vmatpush3.bf16.msra.mxu0 %v517_v29  ;;  %873 = vmatpush3.bf16.msra.mxu1 %v517_v29 }
 0x2b1   :  { %859 = vmatmul.mubr.msk.bf16.vlgmr.msra.gmra.mxu0 %vm266_vm2, %v892_v30  ;;  %863 = vmatmul.mubr.msk.bf16.vlgmr.msra.gmra.mxu1 %vm266_vm2, %v893_v31 }
 0x371   :  { %v860_v38 = vpop.f32.mrf.mxu0  ;;  %v864_v39 = vpop.f32.mrf.mxu1 }
 0x372   :  { %v652_v41 = vadd.f32 %v860_v38, %v550_v34  ;;  %v668_v42 = vadd.f32 %v864_v39, %v570_v40 }
 0x373   :  { %v643_v43 = vpop.f32.mrf.mxu0  ;;  %v659_v44 = vpop.f32.mrf.mxu1 }
 0x374   :  { %v644_v46 = vadd.f32 %v643_v43, %v540_v32  ;;  %v660_v47 = vadd.f32 %v659_v44, %v560_v36  ;;  %v676_v52 = vsel %vm96_vm1, %v652_v41, -inf  ;;  %v682_v53 = vsel %vm96_vm1, %v668_v42, -inf }
 0x375   :  { %v861_v48 = vpop.f32.mrf.mxu0  ;;  %v865_v49 = vpop.f32.mrf.mxu1  ;;  %v683_v1 = vmax.f32 %v676_v52, %v682_v53 }
 0x376   :  { %v655_v50 = vadd.f32 %v861_v48, %v555_v35  ;;  %v671_v51 = vadd.f32 %v865_v49, %v575_v45  ;;  %v674_v54 = vsel %vm96_vm1, %v644_v46, -inf  ;;  %v678_v55 = vsel %vm96_vm1, %v660_v47, -inf }
 0x377   :  { %v646_v56 = vpop.f32.mrf.mxu0  ;;  %v662_v57 = vpop.f32.mrf.mxu1  ;;  %v679_v2 = vmax.f32 %v674_v54, %v678_v55 }
 0x378   :  { %v677_v58 = vsel %vm96_vm1, %v655_v50, -inf  ;;  %v684_v59 = vsel %vm96_vm1, %v671_v51, -inf  ;;  %v647_v60 = vadd.f32 %v646_v56, %v545_v33  ;;  %v663_v61 = vadd.f32 %v662_v57, %v565_v37 }
 0x379   :  { %v685_v62 = vmax.f32 %v677_v58, %v684_v59 }
 0x37a   :  { %v675_v63 = vsel %vm96_vm1, %v647_v60, -inf  ;;  %v680_v0 = vsel %vm96_vm1, %v663_v61, -inf }
 0x37b   :  { %v681_v3 = vmax.f32 %v675_v63, %v680_v0  ;;  %v687_v4 = vmax.f32 %v683_v1, %v685_v62 }
 0x37d   :  { %v686_v5 = vmax.f32 %v679_v2, %v681_v3 }
 0x37f   :  { %v688_v6 = vmax.f32 %v686_v5, %v687_v4 }
 0x381   :  { %v689_v7 = vrot.slane %v688_v6, 4 }
 0x383   :  { %v690_v8 = vmax.f32 %v688_v6, %v689_v7 }
 0x385   :  { %v691_v9 = vrot.slane %v690_v8, 2 }
 0x387   :  { %v692_v10 = vmax.f32 %v690_v8, %v691_v9 }
 0x389   :  { %v693_v11 = vrot.slane %v692_v10, 1 }
 0x38b   :  { %v694_v12 = vmax.f32 %v692_v10, %v693_v11 }
 0x38d   :  { %v695_v13 = vsub.f32 %v644_v46, %v694_v12  ;;  %v696_v14 = vsub.f32 %v647_v60, %v694_v12  ;;  %v697_v15 = vsub.f32 %v652_v41, %v694_v12  ;;  %v698_v16 = vsub.f32 %v655_v50, %v694_v12 }
 0x38e   :  { %v699_v17 = vsub.f32 %v660_v47, %v694_v12  ;;  %v700_v21 = vsub.f32 %v663_v61, %v694_v12  ;;  %v701_v23 = vsub.f32 %v668_v42, %v694_v12  ;;  %v702_v25 = vsub.f32 %v671_v51, %v694_v12 }
 0x38f   :  { %v703_v18 = vmul.f32 1.442695, %v695_v13  ;;  %v705_v19 = vmul.f32 1.442695, %v696_v14  ;;  %v707_v20 = vmul.f32 1.442695, %v697_v15 }
 0x390   :  { %v709_v22 = vmul.f32 1.442695, %v698_v16  ;;  %v711_v24 = vmul.f32 1.442695, %v699_v17  ;;  %v713_v26 = vmul.f32 1.442695, %v700_v21 }
 0x391   :  { %894 = vpow2.f32 %v703_v18  ;;  %v715_v27 = vmul.f32 1.442695, %v701_v23  ;;  %v717_v28 = vmul.f32 1.442695, %v702_v25 }
 0x392   :  { %896 = vpow2.f32 %v705_v19 }
 0x393   :  { %898 = vpow2.f32 %v707_v20 }
 0x394   :  { %900 = vpow2.f32 %v709_v22 }
 0x395   :  { %902 = vpow2.f32 %v711_v24 }
 0x396   :  { %904 = vpow2.f32 %v713_v26 }
 0x397   :  { %906 = vpow2.f32 %v715_v27 }
 0x398   :  { %908 = vpow2.f32 %v717_v28 }
 0x39e   :  { %v895_v29 = vpop.eup %894 }
 0x39f   :  { %v897_v30 = vpop.eup %896  ;;  %v719_v31 = vsel %vm96_vm1, %v895_v29, 0.0 }
 0x3a0   :  { %v899_v32 = vpop.eup %898  ;;  %v720_v33 = vsel %vm96_vm1, %v897_v30, 0.0 }
 0x3a1   :  { %v901_v34 = vpop.eup %900  ;;  %v721_v35 = vadd.f32 %v720_v33, %v719_v31  ;;  %v722_v36 = vsel %vm96_vm1, %v899_v32, 0.0 }
 0x3a2   :  { %v903_v37 = vpop.eup %902  ;;  %v724_v39 = vsel %vm96_vm1, %v901_v34, 0.0 }
 0x3a3   :  { %v723_v38 = vadd.f32 %v722_v36, %v721_v35  ;;  %v905_v40 = vpop.eup %904  ;;  %v726_v42 = vsel %vm96_vm1, %v903_v37, 0.0 }
 0x3a4   :  { %v907_v43 = vpop.eup %906  ;;  %v728_v45 = vsel %vm96_vm1, %v905_v40, 0.0 }
 0x3a5   :  { %v725_v41 = vadd.f32 %v724_v39, %v723_v38  ;;  %v909_v46 = vpop.eup %908  ;;  %v730_v48 = vsel %vm96_vm1, %v907_v43, 0.0 }
 0x3a6   :  { %v732_v50 = vsel %vm96_vm1, %v909_v46, 0.0 }
 0x3a7   :  { %v727_v44 = vadd.f32 %v726_v42, %v725_v41 }
 0x3a9   :  { %v729_v47 = vadd.f32 %v728_v45, %v727_v44 }
 0x3ab   :  { %v731_v49 = vadd.f32 %v730_v48, %v729_v47 }
 0x3ad   :  { %v733_v51 = vadd.f32 %v732_v50, %v731_v49 }
 0x3af   :  { %v734_v52 = vrot.slane %v733_v51, 4 }
 0x3b1   :  { %v735_v53 = vadd.f32 %v734_v52, %v733_v51 }
 0x3b3   :  { %v736_v54 = vrot.slane %v735_v53, 2 }
 0x3b5   :  { %v737_v55 = vadd.f32 %v736_v54, %v735_v53 }
 0x3b7   :  { %v738_v56 = vrot.slane %v737_v55, 1 }
 0x3b9   :  { %v739_v57 = vadd.f32 %v738_v56, %v737_v55 }
 0x3bb   :  { %910 = vrcp.f32 %v739_v57 }
 0x3c8   :  { %v911_v58 = vpop.eup %910 }
 0x3c9   :  { %v741_v59 = vmul.f32 %v911_v58, %v895_v29 }
 0x3cb   :  { %742 = vst.msk [vmem:[%s1125_s4] sm:$0xff] %vm96_vm1, %v741_v59 }

</bundles_post_ra>
